<compile_context>
chip_gen: v6e
topology: v6e:2x2x1
jax: 0.10.0
libtpu: 0.0.40
codegen_flags: <defaults>
</compile_context>

<pallas_src>
import functools

import jax
import jax.numpy as jnp
from jax.experimental import pallas as pl
from jax.experimental.pallas import tpu as pltpu

GAMMA, ZETA = -0.1, 1.1   # AdaRound rectified-sigmoid constants

_ROW_ALIGN = 16           # sublane-align (covers f32 (8,·) and bf16 (16,·) tiles)
_LANE_ALIGN = 128         # lane-dense stores


# ----------------------------- Pallas kernel --------------------------------
def _adaround_kernel(x_ref, scale_ref, zp_ref, a_ref, o_ref,
                     *, n_levels: int, soft_targets: bool):
    x = x_ref[...].astype(jnp.float32)    # (rt, lt) tile, upcast in-kernel
    scale = scale_ref[...]                # (rt, 1)  f32, broadcast over lanes
    zp = zp_ref[...]                      # (rt, 1)  f32
    alpha = a_ref[...]                    # (rt, lt) f32

    # Exact divide on purpose (see header note): the result feeds floor().
    x_floor = jnp.floor(x / scale)

    if soft_targets:
        h = jnp.clip(jax.nn.sigmoid(alpha) * (ZETA - GAMMA) + GAMMA, 0.0, 1.0)
        x_int = x_floor + h
    else:
        # Hard targets: sign compare done in-kernel (free under the DMA).
        x_int = x_floor + (alpha >= 0.0).astype(jnp.float32)

    x_quant = jnp.clip(x_int + zp, 0.0, float(n_levels - 1))
    o_ref[...] = ((x_quant - zp) * scale).astype(o_ref.dtype)


# ------------------------------ Tiling helper --------------------------------
def _pick_tile(full: int, align: int, cap: int) -> int:
    """Block size along one axis.

    If the whole axis fits in the cap, use the full extent (always a legal
    block shape regardless of alignment).  Otherwise use the largest
    `align`-multiple <= cap; the boundary block is then a partial block that
    Pallas masks on store.
    """
    if full <= cap:
        return full
    return max(align, (cap // align) * align)


# ------------------------------- Host wrapper --------------------------------
def adaround_forward(weight, scale, zero_point, alpha, *, n_levels: int,
                     soft_targets: bool = False,
                     row_tile: int = 512, lane_tile: int = 2048,
                     donate_input: bool = False):
    """AdaRound forward (learned_hard_sigmoid, linear scale method).

    weight: (O, ...) conv/linear weight (OIHW etc.), any float dtype.
    scale / zero_point: per output channel, broadcastable to (O, 1).
    alpha: same numel/layout as weight.
    Returns the fake-quantized weight with the original shape AND dtype.
    """
    orig_shape = weight.shape
    O = orig_shape[0]
    x2d = weight.reshape(O, -1)                       # native dtype, no cast
    K = x2d.shape[1]

    scale2d = jnp.asarray(scale, jnp.float32).reshape(O, 1)
    zp2d = jnp.asarray(zero_point, jnp.float32).reshape(O, 1)
    a2d = jnp.asarray(alpha, jnp.float32).reshape(O, K)

    rt = _pick_tile(O, _ROW_ALIGN, row_tile)
    lt = _pick_tile(K, _LANE_ALIGN, lane_tile)
    # Grid order (rows, lanes): lanes is the minor (fastest) axis so the
    # (rt, 1) scale/zp blocks keep the same block index across the inner loop
    # and are not re-DMA'd.  Do not flip this order.
    grid = (pl.cdiv(O, rt), pl.cdiv(K, lt))

    kernel = functools.partial(_adaround_kernel,
                               n_levels=n_levels, soft_targets=soft_targets)

    n_elem = O * K
    wbytes = x2d.dtype.itemsize
    cost = pl.CostEstimate(
        flops=9 * n_elem,
        transcendentals=(n_elem if soft_targets else 0),
        bytes_accessed=(2 * wbytes + 4) * n_elem + 8 * O,  # x + out + alpha + scale/zp
    )

    out2d = pl.pallas_call(
        kernel,
        out_shape=jax.ShapeDtypeStruct((O, K), x2d.dtype),
        grid=grid,
        in_specs=[
            pl.BlockSpec((rt, lt), lambda i, j: (i, j)),   # x (native dtype)
            pl.BlockSpec((rt, 1), lambda i, j: (i, 0)),    # scale (per channel)
            pl.BlockSpec((rt, 1), lambda i, j: (i, 0)),    # zero_point
            pl.BlockSpec((rt, lt), lambda i, j: (i, j)),   # alpha (f32)
        ],
        out_specs=pl.BlockSpec((rt, lt), lambda i, j: (i, j)),
        compiler_params=pltpu.CompilerParams(
            dimension_semantics=("parallel", "parallel"),  # v7x: shard over both TCs
            vmem_limit_bytes=48 * 1024 * 1024,
        ),
        cost_estimate=cost,
        # Optional: donate the (reshaped) weight buffer to the output for HBM
        # headroom when quantizing many layers; shapes and dtypes match.
        input_output_aliases=({0: 0} if donate_input else {}),
    )(x2d, scale2d, zp2d, a2d)

    return out2d.reshape(orig_shape)


# --------------------------- Parameter init (glue) ---------------------------
def init_uniform_quant_params(w2d, n_bits: int):
    """Channel-wise min/max UniformQuantizer init (scale_method='linear_minmax')."""
    n_levels = 2 ** n_bits
    w2d = w2d.astype(jnp.float32)
    w_min = jnp.minimum(jnp.min(w2d, axis=1, keepdims=True), 0.0)
    w_max = jnp.maximum(jnp.max(w2d, axis=1, keepdims=True), 0.0)
    scale = (w_max - w_min) / float(n_levels - 1)
    scale = jnp.maximum(scale, 1e-8)
    zero_point = jnp.round(-w_min / scale)
    return scale, zero_point, n_levels


def init_alpha(w2d, scale):
    """AdaRound alpha init: inverse rectified sigmoid of the rounding residual."""
    w2d = w2d.astype(jnp.float32)
    x_floor = jnp.floor(w2d / scale)
    rest = w2d / scale - x_floor                      # in [0, 1)
    alpha = -jnp.log((ZETA - GAMMA) / (rest - GAMMA) - 1.0)
    return alpha


# ------------------------------ Reference (JAX) ------------------------------
def adaround_reference(x2d, scale, zp, alpha, n_levels, soft_targets=False):
    x = x2d.astype(jnp.float32)
    x_floor = jnp.floor(x / scale)
    if soft_targets:
        h = jnp.clip(jax.nn.sigmoid(alpha) * (ZETA - GAMMA) + GAMMA, 0.0, 1.0)
        x_int = x_floor + h
    else:
        x_int = x_floor + (alpha >= 0.0).astype(jnp.float32)
    x_quant = jnp.clip(x_int + zp, 0.0, float(n_levels - 1))
    return ((x_quant - zp) * scale).astype(x2d.dtype)


# ----------------------------------- Main ------------------------------------
if __name__ == "__main__":
    key = jax.random.PRNGKey(0)
    k1, k2, k3 = jax.random.split(key, 3)
    n_bits = 4

    # --- Case 1: small conv weight in OIHW layout [4, 4, 3, 3], f32 ---------
    O, C, KH, KW = 4, 4, 3, 3
    weight = jax.random.normal(k1, (O, C, KH, KW), dtype=jnp.float32) * 0.5
    w2d = weight.reshape(O, C * KH * KW)

    scale, zero_point, n_levels = init_uniform_quant_params(w2d, n_bits)
    alpha = init_alpha(w2d, scale)

    out_hard = jax.block_until_ready(
        adaround_forward(weight, scale, zero_point, alpha,
                         n_levels=n_levels, soft_targets=False))
    out_soft = jax.block_until_ready(
        adaround_forward(weight, scale, zero_point, alpha,
                         n_levels=n_levels, soft_targets=True))

    ref_hard = adaround_reference(w2d, scale, zero_point, alpha,
                                  n_levels, False).reshape(weight.shape)
    ref_soft = adaround_reference(w2d, scale, zero_point, alpha,
                                  n_levels, True).reshape(weight.shape)
    assert out_hard.shape == weight.shape and out_hard.dtype == weight.dtype
    assert jnp.allclose(out_hard, ref_hard, atol=1e-5, rtol=1e-5)
    assert jnp.allclose(out_soft, ref_soft, atol=1e-5, rtol=1e-5)

    # --- Case 2: multi-tile grid with partial boundary blocks (no host pad) --
    O2, K2 = 64, 300                     # grid (2, cdiv(300,128)=3); last lane block is partial
    w2 = jax.random.normal(k2, (O2, K2), dtype=jnp.float32)
    s2, z2, nl2 = init_uniform_quant_params(w2, n_bits)
    a2 = init_alpha(w2, s2)

    out2_hard = jax.block_until_ready(
        adaround_forward(w2, s2, z2, a2, n_levels=nl2, soft_targets=False,
                         row_tile=32, lane_tile=128))
    out2_soft = jax.block_until_ready(
        adaround_forward(w2, s2, z2, a2, n_levels=nl2, soft_targets=True,
                         row_tile=32, lane_tile=128))
    assert jnp.allclose(out2_hard,
                        adaround_reference(w2, s2, z2, a2, nl2, False),
                        atol=1e-5, rtol=1e-5)
    assert jnp.allclose(out2_soft,
                        adaround_reference(w2, s2, z2, a2, nl2, True),
                        atol=1e-5, rtol=1e-5)

    # --- Case 3: bf16 weight dtype passthrough (output stays bf16) ----------
    O3, K3 = 32, 200
    w3 = (jax.random.normal(k3, (O3, K3), dtype=jnp.float32) * 0.3).astype(jnp.bfloat16)
    s3, z3, nl3 = init_uniform_quant_params(w3, n_bits)
    a3 = init_alpha(w3, s3)

    out3_hard = jax.block_until_ready(
        adaround_forward(w3, s3, z3, a3, n_levels=nl3, soft_targets=False))
    out3_soft = jax.block_until_ready(
        adaround_forward(w3, s3, z3, a3, n_levels=nl3, soft_targets=True))
    assert out3_hard.dtype == jnp.bfloat16 and out3_soft.dtype == jnp.bfloat16
    ref3_hard = adaround_reference(w3, s3, z3, a3, nl3, False)
    ref3_soft = adaround_reference(w3, s3, z3, a3, nl3, True)
    assert jnp.allclose(out3_hard.astype(jnp.float32), ref3_hard.astype(jnp.float32),
                        atol=1e-2, rtol=1e-2)
    assert jnp.allclose(out3_soft.astype(jnp.float32), ref3_soft.astype(jnp.float32),
                        atol=1e-2, rtol=1e-2)

    print("KERNEL_OK")
</pallas_src>

<mosaic_0001>
module attributes {stable_mosaic.version = 11 : i64} {
  func.func @_adaround_kernel(%arg0: i32, %arg1: i32, %arg2: memref<4x36xf32, #tpu.memory_space<vmem>>, %arg3: memref<4x1xf32, #tpu.memory_space<vmem>>, %arg4: memref<4x1xf32, #tpu.memory_space<vmem>>, %arg5: memref<4x36xf32, #tpu.memory_space<vmem>>, %arg6: memref<4x36xf32, #tpu.memory_space<vmem>>) attributes {dimension_semantics = [#tpu.dimension_semantics<parallel>, #tpu.dimension_semantics<parallel>], iteration_bounds = array<i64: 1, 1>, scalar_prefetch = 0 : i64, scratch_operands = 0 : i64, tpu.core_type = #tpu.core_type<tc>, window_params = [{transform_indices = @transform_0, window_bounds = array<i64: 4, 36>}, {transform_indices = @transform_1, window_bounds = array<i64: 4, 1>}, {transform_indices = @transform_2, window_bounds = array<i64: 4, 1>}, {transform_indices = @transform_3, window_bounds = array<i64: 4, 36>}, {transform_indices = @transform_4, window_bounds = array<i64: 4, 36>}]} {
    %c0 = arith.constant 0 : index
    %c0_0 = arith.constant 0 : index
    %0 = vector.load %arg2[%c0, %c0_0] : memref<4x36xf32, #tpu.memory_space<vmem>>, vector<4x36xf32>
    %c0_1 = arith.constant 0 : index
    %c0_2 = arith.constant 0 : index
    %1 = vector.load %arg3[%c0_1, %c0_2] : memref<4x1xf32, #tpu.memory_space<vmem>>, vector<4x1xf32>
    %c0_3 = arith.constant 0 : index
    %c0_4 = arith.constant 0 : index
    %2 = vector.load %arg4[%c0_3, %c0_4] : memref<4x1xf32, #tpu.memory_space<vmem>>, vector<4x1xf32>
    %c0_5 = arith.constant 0 : index
    %c0_6 = arith.constant 0 : index
    %3 = vector.load %arg5[%c0_5, %c0_6] : memref<4x36xf32, #tpu.memory_space<vmem>>, vector<4x36xf32>
    %4 = vector.broadcast %1 : vector<4x1xf32> to vector<4x36xf32>
    %5 = arith.divf %0, %4 : vector<4x36xf32>
    %6 = math.floor %5 : vector<4x36xf32>
    %cst = arith.constant 0.000000e+00 : f32
    %7 = vector.broadcast %cst : f32 to vector<4x36xf32>
    %8 = arith.cmpf oge, %3, %7 : vector<4x36xf32>
    %9 = arith.extui %8 : vector<4x36xi1> to vector<4x36xi32>
    %10 = arith.sitofp %9 : vector<4x36xi32> to vector<4x36xf32>
    %11 = arith.addf %6, %10 : vector<4x36xf32>
    %12 = vector.broadcast %2 : vector<4x1xf32> to vector<4x36xf32>
    %13 = arith.addf %11, %12 : vector<4x36xf32>
    %cst_7 = arith.constant 0.000000e+00 : f32
    %cst_8 = arith.constant 1.500000e+01 : f32
    %14 = vector.broadcast %cst_7 : f32 to vector<4x36xf32>
    %15 = arith.maximumf %14, %13 : vector<4x36xf32>
    %16 = vector.broadcast %cst_8 : f32 to vector<4x36xf32>
    %17 = arith.minimumf %16, %15 : vector<4x36xf32>
    %18 = vector.broadcast %2 : vector<4x1xf32> to vector<4x36xf32>
    %19 = arith.subf %17, %18 : vector<4x36xf32>
    %20 = vector.broadcast %1 : vector<4x1xf32> to vector<4x36xf32>
    %21 = arith.mulf %19, %20 : vector<4x36xf32>
    %c0_9 = arith.constant 0 : index
    %c0_10 = arith.constant 0 : index
    %22 = vector.load %arg6[%c0_9, %c0_10] : memref<4x36xf32, #tpu.memory_space<vmem>>, vector<4x36xf32>
    tpu.vector_store %arg6[%c0_9, %c0_10], %21 {strides = array<i32>} : memref<4x36xf32, #tpu.memory_space<vmem>>, vector<4x36xf32>,
    return
  }
  func.func @transform_0(%arg0: i32, %arg1: i32) -> (i32, i32) {
    %c0_i32 = arith.constant 0 : i32
    return %arg0, %arg1 : i32, i32
  }
  func.func @transform_1(%arg0: i32, %arg1: i32) -> (i32, i32) {
    %c0_i32 = arith.constant 0 : i32
    %c0_i32_0 = arith.constant 0 : i32
    return %arg0, %c0_i32 : i32, i32
  }
  func.func @transform_2(%arg0: i32, %arg1: i32) -> (i32, i32) {
    %c0_i32 = arith.constant 0 : i32
    %c0_i32_0 = arith.constant 0 : i32
    return %arg0, %c0_i32 : i32, i32
  }
  func.func @transform_3(%arg0: i32, %arg1: i32) -> (i32, i32) {
    %c0_i32 = arith.constant 0 : i32
    return %arg0, %arg1 : i32, i32
  }
  func.func @transform_4(%arg0: i32, %arg1: i32) -> (i32, i32) {
    %c0_i32 = arith.constant 0 : i32
    return %arg0, %arg1 : i32, i32
  }
}

</mosaic_0001>

<bundles_post_ra>
// kernel: tpu_custom_call.1
= control target key start
LH: loop header
LB: loop body
LE: loop exit
PB: predicated region body
PF: predicated region fallthrough
CT: control target
= control target key end

     0   :  { %v89_v1 = vmov 0   ;;  %s132_s0 = inlined_call_operand.vmem [shape: f32[4,36], index: 0, kind: input, shape index: {}]   ;;  %s133_s1 = inlined_call_operand.vmem [shape: f32[4,1], index: 1, kind: input, shape index: {}]   ;;  %s134_s2 = inlined_call_operand.vmem [shape: f32[4,1], index: 2, kind: input, shape index: {}]   ;;  %s135_s3 = inlined_call_operand.vmem [shape: f32[4,36], index: 3, kind: input, shape index: {}]   ;;  %s136_s4 = inlined_call_operand.hbm [shape: f32[4,36], index: 4, kind: output, shape index: {}]  }
   0x1   :  { %v19_v0 = vld [vmem:[%s133_s1] sm:$0xf]  ;;  %64 = vset.pattern.permute.xlu0 %v89_v1 }
   0x2   :  { %9 = vsyncpa [#allocation3], 0  ;;  %24 = vperm.xlu0 %64, %v19_v0   ;;  %v20_v2 = vld [vmem:[%s134_s2] sm:$0xf]  ;;  %v90_v8 = vmov 0.0   ;;  %s91_s1 = smov [#allocation2]  }
   0x3   :  { %v21_v4 = vld [vmem:[%s135_s3] sm:$0xf]  ;;  %s52_s2 = sshll.u32 %s91_s1, 4  ;;  %vm44_vm1 = vcmask 289792   ;;  %s53_s2 = int_to_ptr.vmem [resolvable:$true] %s52_s2 }
   0x4   :  { %v18_v5 = vld [vmem:[%s132_s0] sm:$0xf]  ;;  %vm30_vm0 = vcmp.ge.f32.partialorder %v21_v4, 0.0  ;;  %s67_s3 = scalar_lea.vmem %s53_s2, 64  ;;  %p72_p1 = scmp.lt.s32.totalorder %s53_s2, %s53_s2 }
   0x5   :  { %v60_v9 = vsel %vm30_vm0, 1.0, %v90_v8  ;;  %p68_p0 = scmp.ne.s32.totalorder %s53_s2, %s67_s3  ;;  %p73_p2 = scmp.lt.s32.totalorder %s67_s3, %s67_s3 }
   0x6   :  { %36 = vperm.xlu0 %64, %v20_v2  }
   0x7   :  { %p74_p3 = por %p73_p2, %p72_p1 }
   0x9   :  { %p75_p4 = pnand %p74_p3, %p68_p0 }
  0x7d   :  { %v25_v3 = vpop.permute.xlu0 %24 }
  0x7e   :  { %65 = vrcp.f32 %v25_v3 }
  0x81   :  { %v37_v12 = vpop.permute.xlu0 %36 }
  0x8b   :  { %v66_v6 = vpop.eup %65 }
  0x8c   :  { %v28_v7 = vmul.f32 %v66_v6, %v18_v5 }
  0x8e   :  { %v29_v10 = vfloor.f32 %v28_v7 }
  0x90   :  { %v33_v11 = vadd.f32 %v60_v9, %v29_v10 }
  0x92   :  { %v39_v13 = vadd.f32 %v37_v12, %v33_v11 }
  0x94   :  { %v40_v14 = vmax.f32 %v39_v13, 0.0 }
  0x96   :  { %v41_v15 = vmin.f32 %v40_v14, 15.0 }
  0x98   :  { %v42_v16 = vsub.f32 %v41_v15, %v37_v12 }
  0x9a   :  { %v43_v17 = vmul.f32 %v42_v16, %v25_v3 }
  0x9c   :  { %45 = vst.msk [vmem:[#allocation2] sm:$0xf] %vm44_vm1, %v43_v17 }
  0x9d   :  { %78 = shalt.err (!%p75_p4)
}
  0x9e   :  { %55 = dma.vmem_to_hbm [thread:$0]  %s53_s2, 64, %s136_s4, [#allocation3]  }
  0x9f   :  { %87 = dma.done.wait [#allocation3], 64  }
  0xa0   :  { %88 = vsyncadd [#allocation3], 4294967232 }
  0xa1   :  { %59 = vsyncpa [#allocation3], 1 }

</bundles_post_ra>
